<compile_context>
chip_gen: v6e
topology: v6e:2x2x1
jax: 0.10.0
libtpu: 0.0.40
codegen_flags: <defaults>
</compile_context>

<pallas_src>
import jax
import jax.numpy as jnp
from jax.experimental import pallas as pl
from jax.experimental.pallas import tpu as pltpu


def _round_up(x, m):
    return ((x + m - 1) // m) * m


# -----------------------------------------------------------------------------
# Kernels
# -----------------------------------------------------------------------------

def _ffn_kernel_resident(x_ref, w1_ref, b1_ref, w2_ref, b2_ref, o_ref):
    # Fully weight-resident: both matmuls in one grid step; `hid` never leaves VMEM.
    x = x_ref[...].astype(w1_ref.dtype)                      # cast fused into kernel
    hid = jnp.dot(x, w1_ref[...], preferred_element_type=jnp.float32)
    hid = jnp.maximum(hid + b1_ref[...], 0.0)                # bias-add + ReLU in f32
    # dropout == identity (eval mode)
    out = jnp.dot(hid.astype(w2_ref.dtype), w2_ref[...],
                  preferred_element_type=jnp.float32) + b2_ref[...]
    o_ref[...] = out.astype(o_ref.dtype)


def _ffn_kernel_tiled_n(x_ref, w1_ref, b1_ref, w2_ref, b2_ref, o_ref, hid_ref):
    # grid = (grid_m, grid_n): W1 stays resident, W2 streams in (K, tn) slabs.
    # `hid` for this batch tile is computed once (j == 0) into VMEM scratch.
    @pl.when(pl.program_id(1) == 0)
    def _():
        x = x_ref[...].astype(w1_ref.dtype)
        h = jnp.dot(x, w1_ref[...], preferred_element_type=jnp.float32)
        hid_ref[...] = jnp.maximum(h + b1_ref[...], 0.0).astype(hid_ref.dtype)

    out = jnp.dot(hid_ref[...], w2_ref[...],
                  preferred_element_type=jnp.float32) + b2_ref[...]
    o_ref[...] = out.astype(o_ref.dtype)


# -----------------------------------------------------------------------------
# One-time parameter preparation (off the per-forward hot path)
# -----------------------------------------------------------------------------

def prepare_ffn_params(w1, b1, w2, b2, *, mxu_dtype=jnp.bfloat16):
    """Pad feature dims to multiples of 128 and cast weights to the MXU dtype.

    Call ONCE at parameter-init / load time, not per forward, so the pad/cast HBM
    traffic is off the hot path.  Weights are stored pre-transposed: y = x @ w + b.
    Zero padding is exact: padded b1 entries are 0, so padded hidden columns stay 0
    after ReLU and contribute nothing to the second matmul.
    """
    in_feat = w1.shape[0]
    out_feat = w2.shape[1]
    K = _round_up(in_feat, 128)
    N = _round_up(out_feat, 128)
    w1p = jnp.pad(w1.astype(mxu_dtype), ((0, K - in_feat), (0, K - in_feat)))
    w2p = jnp.pad(w2.astype(mxu_dtype), ((0, K - in_feat), (0, N - out_feat)))
    b1p = jnp.pad(b1.astype(jnp.float32), (0, K - in_feat)).reshape(1, K)
    b2p = jnp.pad(b2.astype(jnp.float32), (0, N - out_feat)).reshape(1, N)
    return dict(w1=w1p, b1=b1p, w2=w2p, b2=b2p,
                in_feat=in_feat, out_feat=out_feat, mxu_dtype=mxu_dtype)


# -----------------------------------------------------------------------------
# Forward
# -----------------------------------------------------------------------------

def ffn_forward(x, params, *, block_m=512, out_dtype=None, force_tiled=False):
    """x: [..., in_feat]; params from prepare_ffn_params. Returns [..., out_feat]."""
    w1p, b1p, w2p, b2p = params["w1"], params["b1"], params["w2"], params["b2"]
    in_feat, out_feat = params["in_feat"], params["out_feat"]
    mxu_dtype = params["mxu_dtype"]
    K = w1p.shape[0]
    N = w2p.shape[1]

    lead = x.shape[:-1]
    assert x.shape[-1] == in_feat, (x.shape, in_feat)
    x2 = x.reshape(-1, in_feat)
    B = x2.shape[0]
    out_dtype = out_dtype or x.dtype           # pass jnp.bfloat16 to halve writeback

    # --- batch tiling --------------------------------------------------------
    tm = min(block_m, _round_up(B, 8))
    M = _round_up(B, tm)
    grid_m = M // tm

    # --- activations: at most ONE pad+cast pass, and none when already aligned
    if x2.shape == (M, K):
        xp = x2                                # dtype cast (if any) fused in-kernel
    else:
        xp = jnp.pad(x2.astype(mxu_dtype), ((0, M - B), (0, K - in_feat)))

    isz = jnp.dtype(mxu_dtype).itemsize
    xsz = jnp.dtype(xp.dtype).itemsize
    osz = jnp.dtype(out_dtype).itemsize

    # --- per-generation VMEM budget ------------------------------------------
    try:
        vmem_cap = int(pltpu.get_tpu_info().vmem_capacity_bytes)
    except Exception:
        vmem_cap = 128 * 1024 * 1024           # v5e/v6e default
    vmem_budget = int(vmem_cap * 0.8)          # ~102 MiB v5e/v6e, ~51 MiB v7x

    weights_bytes = (K * K + K * N) * isz + (K + N) * 4
    hid_tmp = tm * K * (4 + isz)               # f32 hid + its bf16 cast (in-kernel)
    resident_need = (2 * weights_bytes                       # conservative 2x buffers
                     + 2 * tm * K * xsz + 2 * tm * N * osz   # pipelined x / out tiles
                     + hid_tmp
                     + tm * (K + N) * 4)                     # broadcast bias tiles
    flops = 2 * M * K * (K + N)

    if not force_tiled and resident_need <= vmem_budget:
        # ---------------- weight-resident path --------------------------------
        vmem_limit = int(min(max(1.5 * resident_need, 32 * 1024 * 1024), vmem_budget))
        cost = pl.CostEstimate(
            flops=flops, transcendentals=0,
            bytes_accessed=xp.size * xsz + weights_bytes + M * N * osz)
        out_padded = pl.pallas_call(
            _ffn_kernel_resident,
            out_shape=jax.ShapeDtypeStruct((M, N), out_dtype),
            grid=(grid_m,),
            in_specs=[
                pl.BlockSpec((tm, K), lambda i: (i, 0)),
                # Grid-invariant index maps: weights/biases DMA'd once, VMEM-resident
                # across all batch tiles.
                pl.BlockSpec((K, K), lambda i: (0, 0)),
                pl.BlockSpec((1, K), lambda i: (0, 0)),
                pl.BlockSpec((K, N), lambda i: (0, 0)),
                pl.BlockSpec((1, N), lambda i: (0, 0)),
            ],
            out_specs=pl.BlockSpec((tm, N), lambda i: (i, 0)),
            compiler_params=pltpu.CompilerParams(
                # Batch tiles are independent; on v7x this lets the two TCs split
                # the grid (pltpu.CORE_PARALLEL is the explicit alternative).
                dimension_semantics=("parallel",),
                vmem_limit_bytes=vmem_limit),
            cost_estimate=cost,
        )(xp, w1p, b1p, w2p, b2p)
    else:
        # ---------------- N-tiled fallback (large hidden sizes, v7x) ----------
        def tiled_need(tn):
            return (2 * K * K * isz                 # resident W1 (conservative 2x)
                    + 2 * (K + tn) * 4              # biases
                    + 2 * tm * K * xsz              # x tile
                    + 2 * K * tn * isz              # streamed W2 slab
                    + 2 * tm * tn * osz             # out tile
                    + tm * K * isz                  # hid VMEM scratch (bf16)
                    + tm * K * 4                    # f32 hid temporary
                    + tm * (K + tn) * 4)            # broadcast bias tiles

        tn = 128
        for cand in (512, 256, 128):
            if N % cand == 0 and tiled_need(cand) <= vmem_budget:
                tn = cand
                break
        grid_n = N // tn
        vmem_limit = int(min(max(1.5 * tiled_need(tn), 32 * 1024 * 1024), vmem_budget))
        cost = pl.CostEstimate(
            flops=flops, transcendentals=0,
            bytes_accessed=(xp.size * xsz + K * K * isz + K * 4
                            + grid_m * (K * N * isz + N * 4) + M * N * osz))
        out_padded = pl.pallas_call(
            _ffn_kernel_tiled_n,
            out_shape=jax.ShapeDtypeStruct((M, N), out_dtype),
            grid=(grid_m, grid_n),
            in_specs=[
                pl.BlockSpec((tm, K), lambda i, j: (i, 0)),
                pl.BlockSpec((K, K), lambda i, j: (0, 0)),   # W1 resident
                pl.BlockSpec((1, K), lambda i, j: (0, 0)),
                pl.BlockSpec((K, tn), lambda i, j: (0, j)),  # W2 streamed per j
                pl.BlockSpec((1, tn), lambda i, j: (0, j)),
            ],
            out_specs=pl.BlockSpec((tm, tn), lambda i, j: (i, j)),
            scratch_shapes=[pltpu.VMEM((tm, K), mxu_dtype)],
            compiler_params=pltpu.CompilerParams(
                # j must run sequentially within a batch tile (hid scratch reuse).
                dimension_semantics=("parallel", "arbitrary"),
                vmem_limit_bytes=vmem_limit),
            cost_estimate=cost,
        )(xp, w1p, b1p, w2p, b2p)

    out = out_padded[:B, :out_feat] if (M != B or N != out_feat) else out_padded
    return out.reshape(lead + (out_feat,))


# -----------------------------------------------------------------------------
# Demo / self-test
# -----------------------------------------------------------------------------

def init_linear_params(key, fan_in, fan_out, dtype=jnp.float32):
    """torch.nn.Linear default init U(-1/sqrt(fan_in), 1/sqrt(fan_in)); weight is
    returned already transposed to [fan_in, fan_out] so y = x @ w + b."""
    kw, kb = jax.random.split(key)
    bound = 1.0 / (fan_in ** 0.5)
    w = jax.random.uniform(kw, (fan_in, fan_out), dtype, minval=-bound, maxval=bound)
    b = jax.random.uniform(kb, (fan_out,), dtype, minval=-bound, maxval=bound)
    return w, b


def _ref_ffn(x, w1, b1, w2, b2):
    return jnp.maximum(x @ w1 + b1, 0.0) @ w2 + b2      # dropout identity (eval)


if __name__ == "__main__":
    key = jax.random.PRNGKey(0)

    # --- 1) module-sized demo (resident path) --------------------------------
    k_x, k_l1, k_l2, k2_x, k2_l1, k2_l2 = jax.random.split(key, 6)
    batch, in_feat, out_feat = 8, 32, 16
    x = jax.random.normal(k_x, (batch, in_feat), dtype=jnp.float32)
    w1, b1 = init_linear_params(k_l1, in_feat, in_feat)   # in2hid
    w2, b2 = init_linear_params(k_l2, in_feat, out_feat)  # hid2out

    params = prepare_ffn_params(w1, b1, w2, b2)           # one-time pad + bf16 cast
    out = jax.block_until_ready(ffn_forward(x, params))
    ref = _ref_ffn(x, w1, b1, w2, b2)
    assert out.shape == (batch, out_feat)
    assert jnp.allclose(out, ref, atol=2e-2, rtol=2e-2), \
        float(jnp.max(jnp.abs(out - ref)))

    # --- 2) ragged shapes, forced N-tiled fallback path -----------------------
    b2_, if2, of2 = 24, 160, 272                          # pads to K=256, N=384
    x2 = jax.random.normal(k2_x, (b2_, if2), dtype=jnp.float32)
    w1b, b1b = init_linear_params(k2_l1, if2, if2)
    w2b, b2b = init_linear_params(k2_l2, if2, of2)
    params2 = prepare_ffn_params(w1b, b1b, w2b, b2b)
    out2 = jax.block_until_ready(
        ffn_forward(x2, params2, block_m=8, force_tiled=True))
    ref2 = _ref_ffn(x2, w1b, b1b, w2b, b2b)
    assert out2.shape == (b2_, of2)
    assert jnp.allclose(out2, ref2, atol=5e-2, rtol=5e-2), \
        float(jnp.max(jnp.abs(out2 - ref2)))

    print("KERNEL_OK")
</pallas_src>

<mosaic_0001>
module attributes {stable_mosaic.version = 11 : i64} {
  func.func @_ffn_kernel_resident(%arg0: i32, %arg1: memref<8x128xbf16, #tpu.memory_space<vmem>>, %arg2: memref<128x128xbf16, #tpu.memory_space<vmem>>, %arg3: memref<1x128xf32, #tpu.memory_space<vmem>>, %arg4: memref<128x128xbf16, #tpu.memory_space<vmem>>, %arg5: memref<1x128xf32, #tpu.memory_space<vmem>>, %arg6: memref<8x128xf32, #tpu.memory_space<vmem>>) attributes {dimension_semantics = [#tpu.dimension_semantics<parallel>], iteration_bounds = array<i64: 1>, scalar_prefetch = 0 : i64, scratch_operands = 0 : i64, tpu.core_type = #tpu.core_type<tc>, window_params = [{transform_indices = @transform_0, window_bounds = array<i64: 8, 128>}, {pipeline_mode = #tpu.pipeline_mode<synchronous>, transform_indices = @transform_1, window_bounds = array<i64: 128, 128>}, {pipeline_mode = #tpu.pipeline_mode<synchronous>, transform_indices = @transform_2, window_bounds = array<i64: 1, 128>}, {pipeline_mode = #tpu.pipeline_mode<synchronous>, transform_indices = @transform_3, window_bounds = array<i64: 128, 128>}, {pipeline_mode = #tpu.pipeline_mode<synchronous>, transform_indices = @transform_4, window_bounds = array<i64: 1, 128>}, {transform_indices = @transform_5, window_bounds = array<i64: 8, 128>}]} {
    %c0 = arith.constant 0 : index
    %c0_0 = arith.constant 0 : index
    %0 = vector.load %arg1[%c0, %c0_0] : memref<8x128xbf16, #tpu.memory_space<vmem>>, vector<8x128xbf16>
    %c0_1 = arith.constant 0 : index
    %c0_2 = arith.constant 0 : index
    %1 = vector.load %arg2[%c0_1, %c0_2] : memref<128x128xbf16, #tpu.memory_space<vmem>>, vector<128x128xbf16>
    %cst = arith.constant dense<0.000000e+00> : vector<8x128xf32>
    %2 = tpu.matmul %0, %1, %cst {dimension_numbers = #tpu.dot_dimension_numbers<[1], [0], [0], [1], [0, 0, 1, 1], [], []>} : vector<8x128xbf16>, vector<128x128xbf16>, vector<8x128xf32> -> vector<8x128xf32>
    %c0_3 = arith.constant 0 : index
    %c0_4 = arith.constant 0 : index
    %3 = vector.load %arg3[%c0_3, %c0_4] : memref<1x128xf32, #tpu.memory_space<vmem>>, vector<1x128xf32>
    %4 = vector.broadcast %3 : vector<1x128xf32> to vector<8x128xf32>
    %5 = arith.addf %2, %4 : vector<8x128xf32>
    %cst_5 = arith.constant 0.000000e+00 : f32
    %6 = vector.broadcast %cst_5 : f32 to vector<8x128xf32>
    %7 = arith.maximumf %5, %6 : vector<8x128xf32>
    %8 = arith.truncf %7 : vector<8x128xf32> to vector<8x128xbf16>
    %c0_6 = arith.constant 0 : index
    %c0_7 = arith.constant 0 : index
    %9 = vector.load %arg4[%c0_6, %c0_7] : memref<128x128xbf16, #tpu.memory_space<vmem>>, vector<128x128xbf16>
    %cst_8 = arith.constant dense<0.000000e+00> : vector<8x128xf32>
    %10 = tpu.matmul %8, %9, %cst_8 {dimension_numbers = #tpu.dot_dimension_numbers<[1], [0], [0], [1], [0, 0, 1, 1], [], []>} : vector<8x128xbf16>, vector<128x128xbf16>, vector<8x128xf32> -> vector<8x128xf32>
    %c0_9 = arith.constant 0 : index
    %c0_10 = arith.constant 0 : index
    %11 = vector.load %arg5[%c0_9, %c0_10] : memref<1x128xf32, #tpu.memory_space<vmem>>, vector<1x128xf32>
    %12 = vector.broadcast %11 : vector<1x128xf32> to vector<8x128xf32>
    %13 = arith.addf %10, %12 : vector<8x128xf32>
    %c0_11 = arith.constant 0 : index
    %c0_12 = arith.constant 0 : index
    %14 = vector.load %arg6[%c0_11, %c0_12] : memref<8x128xf32, #tpu.memory_space<vmem>>, vector<8x128xf32>
    tpu.vector_store %arg6[%c0_11, %c0_12], %13 {strides = array<i32>} : memref<8x128xf32, #tpu.memory_space<vmem>>, vector<8x128xf32>,
    return
  }
  func.func @transform_0(%arg0: i32) -> (i32, i32) {
    %c0_i32 = arith.constant 0 : i32
    %c0_i32_0 = arith.constant 0 : i32
    return %arg0, %c0_i32 : i32, i32
  }
  func.func @transform_1(%arg0: i32) -> (i32, i32) {
    %c0_i32 = arith.constant 0 : i32
    %c0_i32_0 = arith.constant 0 : i32
    %c0_i32_1 = arith.constant 0 : i32
    return %c0_i32, %c0_i32_0 : i32, i32
  }
  func.func @transform_2(%arg0: i32) -> (i32, i32) {
    %c0_i32 = arith.constant 0 : i32
    %c0_i32_0 = arith.constant 0 : i32
    %c0_i32_1 = arith.constant 0 : i32
    return %c0_i32, %c0_i32_0 : i32, i32
  }
  func.func @transform_3(%arg0: i32) -> (i32, i32) {
    %c0_i32 = arith.constant 0 : i32
    %c0_i32_0 = arith.constant 0 : i32
    %c0_i32_1 = arith.constant 0 : i32
    return %c0_i32, %c0_i32_0 : i32, i32
  }
  func.func @transform_4(%arg0: i32) -> (i32, i32) {
    %c0_i32 = arith.constant 0 : i32
    %c0_i32_0 = arith.constant 0 : i32
    %c0_i32_1 = arith.constant 0 : i32
    return %c0_i32, %c0_i32_0 : i32, i32
  }
  func.func @transform_5(%arg0: i32) -> (i32, i32) {
    %c0_i32 = arith.constant 0 : i32
    %c0_i32_0 = arith.constant 0 : i32
    return %arg0, %c0_i32 : i32, i32
  }
}

</mosaic_0001>

<bundles_post_ra>
// kernel: tpu_custom_call.1
= control target key start
LH: loop header
LB: loop body
LE: loop exit
PB: predicated region body
PF: predicated region fallthrough
CT: control target
= control target key end

     0   :  { %10 = vsyncpa [#allocation3], 0  ;;  %s545_s0 = inlined_call_operand.hbm [shape: bf16[8,128], index: 0, kind: input, shape index: {}]   ;;  %s546_s1 = inlined_call_operand.hbm [shape: bf16[128,128], index: 1, kind: input, shape index: {}]   ;;  %s547_s2 = inlined_call_operand.vmem [shape: f32[1,128], index: 2, kind: input, shape index: {}]   ;;  %s548_s3 = inlined_call_operand.hbm [shape: bf16[128,128], index: 3, kind: input, shape index: {}]   ;;  %s549_s4 = inlined_call_operand.vmem [shape: f32[1,128], index: 4, kind: input, shape index: {}]   ;;  %s550_s5 = inlined_call_operand.hbm [shape: f32[8,128], index: 5, kind: output, shape index: {}]  }
   0x1   :  { %11 = vsyncpa [#allocation6], 0 }
   0x2   :  { %12 = vsyncpa [#allocation4], 0  ;;  %s489_s18 = smov [#allocation5]  }
   0x3   :  { %s28_s19 = sshll.u32 %s489_s18, 4  ;;  %s29_s19 = int_to_ptr.vmem [resolvable:$true] %s28_s19 }
   0x4   :  { %s411_s20 = scalar_lea.vmem %s29_s19, 1024  ;;  %p416_p1 = scmp.lt.s32.totalorder %s29_s19, %s29_s19 }
   0x5   :  { %p412_p0 = scmp.ne.s32.totalorder %s29_s19, %s411_s20  ;;  %p417_p2 = scmp.lt.s32.totalorder %s411_s20, %s411_s20 }
   0x7   :  { %p418_p3 = por %p417_p2, %p416_p1 }
   0x9   :  { %p419_p4 = pnand %p418_p3, %p412_p0 }
   0xb   :  { %422 = shalt.err (!%p419_p4)
}
   0xc   :  { %s490_s21 = smov 64   ;;  %s491_s22 = smov 4  }
   0xd   :  { %34 = dma.hbm_to_vmem [thread:$0]  %s546_s1, 1024, %s29_s19, [#allocation6], %s490_s21, %s490_s21, %s491_s22  }
   0xe   :  { %s492_s25 = smov [#allocation2]   ;;  %s493_s27 = smov [#allocation7]  }
   0xf   :  { %s19_s26 = sshll.u32 %s492_s25, 4  ;;  %s42_s28 = sshll.u32 %s493_s27, 4  ;;  %s20_s26 = int_to_ptr.vmem [resolvable:$true] %s19_s26  ;;  %s43_s28 = int_to_ptr.vmem [resolvable:$true] %s42_s28 }
  0x10   :  { %s431_s29 = scalar_lea.vmem %s20_s26, 64  ;;  %p436_p6 = scmp.lt.s32.totalorder %s20_s26, %s20_s26 }
  0x11   :  { %p432_p5 = scmp.ne.s32.totalorder %s20_s26, %s431_s29  ;;  %p437_p7 = scmp.lt.s32.totalorder %s431_s29, %s431_s29 }
  0x13   :  { %p438_p8 = por %p437_p7, %p436_p6 }
  0x15   :  { %p439_p9 = pnand %p438_p8, %p432_p5 }
  0x17   :  { %442 = shalt.err (!%p439_p9)
}
  0x18   :  { %22 = dma.hbm_to_vmem [thread:$0]  %s545_s0, 64, %s20_s26, [#allocation3]  }
  0x19   :  { %s451_s7 = scalar_lea.vmem %s43_s28, 1024  ;;  %p456_p11 = scmp.lt.s32.totalorder %s43_s28, %s43_s28 }
  0x1a   :  { %p452_p10 = scmp.ne.s32.totalorder %s43_s28, %s451_s7  ;;  %p457_p12 = scmp.lt.s32.totalorder %s451_s7, %s451_s7 }
  0x1c   :  { %p458_p13 = por %p457_p12, %p456_p11 }
  0x1e   :  { %p459_p0 = pnand %p458_p13, %p452_p10 }
  0x20   :  { %462 = shalt.err (!%p459_p0)
}
  0x21   :  { %48 = dma.hbm_to_vmem [thread:$0]  %s548_s3, 1024, %s43_s28, [#allocation6], %s490_s21, %s490_s21, %s491_s22  }
  0x22   :  { %483 = dma.done.wait [#allocation3], 64  }
  0x23   :  { %484 = vsyncadd [#allocation3], 4294967232 }
  0x24   :  { %485 = dma.done.wait [#allocation6], 2048  }
  0x25   :  { %486 = vsyncadd [#allocation6], 4294965248  ;;  %v494_v0 = vmov 0.0   ;;  %vm495_vm0 = vmmov 0   ;;  %v387_v1 = vld [vmem:[#allocation5 + $0x38] sm:$0xff]   ;;  %v388_v2 = vld [vmem:[#allocation5 + $0x30] sm:$0xff]  }
  0x26   :  { %339 = vmatprep.subr.bf16.mxu0 %v494_v0  ;;  %355 = vmatprep.mubr.msk.bf16.mxu0 %vm495_vm0, %v494_v0  ;;  %v389_v3 = vld [vmem:[#allocation5 + $0x28] sm:$0xff]   ;;  %v395_v4 = vld [vmem:[#allocation7 + $0x38] sm:$0xff]   ;;  %v390_v5 = vld [vmem:[#allocation5 + $0x20] sm:$0xff]   ;;  %s496_s11 = smov [#allocation8]  }
  0x27   :  { %359 = vmatprep.subr.bf16.mxu1 %v494_v0  ;;  %375 = vmatprep.mubr.msk.bf16.mxu1 %vm495_vm0, %v494_v0  ;;  %v396_v6 = vld [vmem:[#allocation7 + $0x30] sm:$0xff]   ;;  %v391_v7 = vld [vmem:[#allocation5 + $0x18] sm:$0xff]   ;;  %v397_v8 = vld [vmem:[#allocation7 + $0x28] sm:$0xff]   ;;  %s293_s12 = sshll.u32 %s496_s11, 4  ;;  %s294_s12 = int_to_ptr.vmem [resolvable:$true] %s293_s12 }
  0x28   :  { %340 = vmatpush3.bf16.msra.mxu0 %v387_v1  ;;  %360 = vmatpush3.bf16.msra.mxu1 %v395_v4  ;;  %v392_v9 = vld [vmem:[#allocation5 + $0x10] sm:$0xff]   ;;  %v398_v10 = vld [vmem:[#allocation7 + $0x20] sm:$0xff]   ;;  %v393_v11 = vld [vmem:[#allocation5 + $0x8] sm:$0xff]   ;;  %p468_p2 = scmp.lt.s32.totalorder %s294_s12, %s294_s12 }
  0x29   :  { %341 = vmatprep.subr.bf16.mxu0 %v494_v0  ;;  %361 = vmatprep.subr.bf16.mxu1 %v494_v0  ;;  %v399_v12 = vld [vmem:[#allocation7 + $0x18] sm:$0xff]   ;;  %v394_v13 = vld [vmem:[#allocation5] sm:$0xff]   ;;  %v400_v14 = vld [vmem:[#allocation7 + $0x10] sm:$0xff]  }
  0x2a   :  { %v61_v15 = vld [vmem:[#allocation2] sm:$0xf]  ;;  %v401_v16 = vld [vmem:[#allocation7 + $0x8] sm:$0xff]   ;;  %v402_v17 = vld [vmem:[#allocation7] sm:$0xff]  }
  0x2b   :  { %v303_v18 = vld [vmem:[%s547_s2] ss:$0 sm:$0xff]  ;;  %s463_s2 = scalar_lea.vmem %s294_s12, 128 }
  0x2c   :  { %342 = vmatpush3.bf16.msra.mxu0 %v388_v2  ;;  %362 = vmatpush3.bf16.msra.mxu1 %v396_v6  ;;  %v312_v26 = vld [vmem:[%s549_s4] ss:$0 sm:$0xff]  ;;  %p464_p1 = scmp.ne.s32.totalorder %s294_s12, %s463_s2  ;;  %p469_p3 = scmp.lt.s32.totalorder %s463_s2, %s463_s2 }
  0x2d   :  { %343 = vmatprep.subr.bf16.mxu0 %v494_v0  ;;  %363 = vmatprep.subr.bf16.mxu1 %v494_v0 }
  0x2e   :  { %p470_p4 = por %p469_p3, %p468_p2 }
  0x30   :  { %344 = vmatpush3.bf16.msra.mxu0 %v389_v3  ;;  %364 = vmatpush3.bf16.msra.mxu1 %v397_v8  ;;  %p471_p5 = pnand %p470_p4, %p464_p1 }
  0x31   :  { %345 = vmatprep.subr.bf16.mxu0 %v494_v0  ;;  %365 = vmatprep.subr.bf16.mxu1 %v494_v0 }
  0x34   :  { %346 = vmatpush3.bf16.msra.mxu0 %v390_v5  ;;  %366 = vmatpush3.bf16.msra.mxu1 %v398_v10 }
  0x35   :  { %347 = vmatprep.subr.bf16.mxu0 %v494_v0  ;;  %367 = vmatprep.subr.bf16.mxu1 %v494_v0 }
  0x38   :  { %348 = vmatpush3.bf16.msra.mxu0 %v391_v7  ;;  %368 = vmatpush3.bf16.msra.mxu1 %v399_v12 }
  0x39   :  { %349 = vmatprep.subr.bf16.mxu0 %v494_v0  ;;  %369 = vmatprep.subr.bf16.mxu1 %v494_v0 }
  0x3c   :  { %350 = vmatpush3.bf16.msra.mxu0 %v392_v9  ;;  %370 = vmatpush3.bf16.msra.mxu1 %v400_v14 }
  0x3d   :  { %351 = vmatprep.subr.bf16.mxu0 %v494_v0  ;;  %371 = vmatprep.subr.bf16.mxu1 %v494_v0 }
  0x40   :  { %352 = vmatpush3.bf16.msra.mxu0 %v393_v11  ;;  %372 = vmatpush3.bf16.msra.mxu1 %v401_v16 }
  0x41   :  { %353 = vmatprep.subr.bf16.mxu0 %v494_v0  ;;  %373 = vmatprep.subr.bf16.mxu1 %v494_v0 }
  0x44   :  { %354 = vmatpush3.bf16.msra.mxu0 %v394_v13  ;;  %374 = vmatpush3.bf16.msra.mxu1 %v402_v17 }
  0x47   :  { %356 = vmatmul.mubr.bf16.vlgmr.msra.gmra.mxu0 %v61_v15 }
 0x107   :  { %v167_v19 = vpop.f32.mrf.mxu0 }
 0x108   :  { %v168_v20 = vadd.f32 %v303_v18, %v167_v19 }
 0x109   :  { %v357_v21 = vpop.f32.mrf.mxu0 }
 0x10a   :  { %v173_v22 = vmax.f32 %v168_v20, 0.0 }
 0x10b   :  { %v170_v23 = vpop.f32.mrf.mxu0 }
 0x10c   :  { %v174_v24 = vpack.c.bf16 %v173_v22, %v173_v22 }
 0x10d   :  { %v358_v25 = vpop.f32.mrf.mxu0 }
 0x10e   :  { %376 = vmatmul.mubr.bf16.vlgmr.msra.gmra.mxu1 %v174_v24 }
 0x1ce   :  { %v280_v27 = vpop.f32.mrf.mxu1 }
 0x1cf   :  { %v281_v28 = vadd.f32 %v312_v26, %v280_v27 }
 0x1d0   :  { %v377_v29 = vpop.f32.mrf.mxu1 }
 0x1d1   :  { %286 = vst [vmem:[#allocation8] sm:$0xff] %v281_v28 }
 0x1d2   :  { %v283_v30 = vpop.f32.mrf.mxu1 }
 0x1d3   :  { %474 = shalt.err (!%p471_p5)
}
 0x1d4   :  { %296 = dma.vmem_to_hbm [thread:$0]  %s294_s12, 128, %s550_s5, [#allocation4]   ;;  %v378_v31 = vpop.f32.mrf.mxu1 }
 0x1d5   :  { %487 = dma.done.wait [#allocation4], 128  }
 0x1d6   :  { %488 = vsyncadd [#allocation4], 4294967168 }
 0x1d7   :  { %300 = vsyncpa [#allocation3], 1 }
 0x1d8   :  { %301 = vsyncpa [#allocation6], 1 }
 0x1d9   :  { %302 = vsyncpa [#allocation4], 1 }

</bundles_post_ra>
